<compile_context>
chip_gen: v6e
topology: v6e:2x2x1
jax: 0.10.0
libtpu: 0.0.40
codegen_flags: <defaults>
</compile_context>

<pallas_src>
import functools

import jax
import jax.numpy as jnp
from jax.experimental import pallas as pl
from jax.experimental.pallas import tpu as pltpu

LN_EPS = 1e-5
LANES = 128


def _round_up(v, m):
    return ((v + m - 1) // m) * m


def _vmem_budget_bytes():
    """Conservative per-kernel VMEM budget that fits every generation's
    default scoped limit (v5e 16 MiB / v6e 32 MiB / v7x 32-of-64 MiB)."""
    try:
        phys = int(pltpu.get_tpu_info().vmem_capacity_bytes)
    except Exception:
        phys = 64 << 20  # assume the smallest physical VMEM (v7x per-TC)
    return min(phys // 4, 12 << 20)


def _choose_tb(B, E, C_store, C_pad, vmem_budget):
    """Rows per grid step: ~1.5 MiB of x traffic per step, >=2 steps when the
    batch can be split (v7x megacore), minimal batch padding, VMEM-clamped."""
    B8 = _round_up(max(B, 1), 8)
    target_rows = max(8, (3 << 19) // (E * 4))        # ~1.5 MiB / row_bytes
    n_steps = max(1, pl.cdiv(B8, target_rows))
    if n_steps == 1 and B8 >= 16:
        n_steps = 2                                   # keep both v7x cores busy
    tb = _round_up(pl.cdiv(B8, n_steps), 8)

    # VMEM: double-buffered x and out tiles + resident folded weight/bias (f32
    # upper bound on element size).
    def vmem_bytes(t):
        return 4 * (2 * t * (E + C_store) + E * C_pad + C_pad)

    while tb > 8 and vmem_bytes(tb) > vmem_budget:
        tb = _round_up(tb // 2, 8)
    return tb


def _cls_head_kernel(x_ref, w_ref, b_ref, o_ref):
    # x_ref: (TB, E)     input tile (pipelined over the batch)
    # w_ref: (E, Cpad)   gamma-folded weight, zero-padded to a lane multiple
    # b_ref: (1, Cpad)   beta-folded bias, zero-padded
    # o_ref: (TB, Cout)  output tile; Cout is either C (default) or Cpad
    x = x_ref[...].astype(jnp.float32)

    # LayerNorm statistics (biased variance, eps inside rsqrt — PyTorch LN).
    mean = jnp.mean(x, axis=-1, keepdims=True)
    xc = x - mean
    var = jnp.mean(xc * xc, axis=-1, keepdims=True)
    xn = xc * jax.lax.rsqrt(var + LN_EPS)

    # Linear with the LN affine already folded into W'/b'.
    logits = jnp.dot(xn, w_ref[...].astype(jnp.float32),
                     preferred_element_type=jnp.float32)
    logits = logits + b_ref[...].astype(jnp.float32)

    # Slice to the stored class width before the sigmoid/store (no-op when the
    # output is lane-dense-padded).
    c_out = o_ref.shape[-1]
    o_ref[...] = jax.nn.sigmoid(logits[:, :c_out]).astype(o_ref.dtype)


@functools.partial(jax.jit, static_argnames=("lane_dense_output",))
def classification_head(x, gamma, beta, weight_t, bias, *,
                        lane_dense_output=False):
    """y = sigmoid(LayerNorm(x) @ weight_t + bias).

    x: (B, E); gamma/beta: (E,); weight_t: (E, C) (== PyTorch weight.T);
    bias: (C,). Returns (B, C) in x.dtype.
    """
    B, E = x.shape
    C = weight_t.shape[1]

    # ---- fold the LayerNorm affine into the linear layer (one-time O(E*C)) --
    #   LN(x) @ W + b == ((x-mean)*inv) @ (gamma[:,None]*W) + (beta @ W + b)
    w_eff = (gamma.astype(jnp.float32)[:, None] * weight_t.astype(jnp.float32))
    b_eff = (beta.astype(jnp.float32) @ weight_t.astype(jnp.float32)
             + bias.astype(jnp.float32))

    # Weight padded to a 128-lane multiple for the MXU; output stays unpadded
    # unless lane_dense_output=True (v5e single-vst-slot fallback).
    C_pad = _round_up(max(C, 1), LANES)
    C_store = C_pad if lane_dense_output else C
    w_pad = jnp.pad(w_eff, ((0, 0), (0, C_pad - C)))
    b_pad = jnp.pad(b_eff, ((0, C_pad - C),)).reshape(1, C_pad)

    # ---- batch tiling ------------------------------------------------------
    tb = _choose_tb(B, E, C_store, C_pad, _vmem_budget_bytes())
    B_pad = _round_up(B, tb)
    x_in = x if B_pad == B else jnp.pad(x, ((0, B_pad - B), (0, 0)))

    elem = jnp.dtype(x.dtype).itemsize
    cost = pl.CostEstimate(
        flops=int(2 * B_pad * E * C_pad),
        transcendentals=int(B_pad * (C_store + 1)),            # sigmoid + rsqrt
        bytes_accessed=int(B_pad * E * elem + B_pad * C_store * elem
                           + 4 * (E * C_pad + C_pad)),
    )

    out = pl.pallas_call(
        _cls_head_kernel,
        out_shape=jax.ShapeDtypeStruct((B_pad, C_store), x.dtype),
        grid_spec=pltpu.PrefetchScalarGridSpec(
            num_scalar_prefetch=0,
            grid=(B_pad // tb,),
            in_specs=[
                # x tile, pipelined over the batch. (If profiling ever shows
                # exposed DMA at step boundaries, try pipeline_mode=pl.Buffered(3).)
                pl.BlockSpec((tb, E), lambda i: (i, 0)),
                pl.BlockSpec((E, C_pad), lambda i: (0, 0)),   # folded W (resident)
                pl.BlockSpec((1, C_pad), lambda i: (0, 0)),   # folded b (resident)
            ],
            out_specs=pl.BlockSpec((tb, C_store), lambda i: (i, 0)),
        ),
        compiler_params=pltpu.CompilerParams(
            dimension_semantics=("parallel",)),
        cost_estimate=cost,
    )(x_in, w_pad, b_pad)

    if B_pad != B or C_store != C:
        out = out[:B, :C]
    return out


def _reference(x, gamma, beta, weight_t, bias):
    xf = x.astype(jnp.float32)
    mean = jnp.mean(xf, axis=-1, keepdims=True)
    var = jnp.mean((xf - mean) ** 2, axis=-1, keepdims=True)
    xn = (xf - mean) / jnp.sqrt(var + LN_EPS)
    xn = xn * gamma + beta
    logits = xn @ weight_t + bias
    return jax.nn.sigmoid(logits)


if __name__ == "__main__":
    emb_size = 32
    n_classes = 4
    batch = 8

    key = jax.random.PRNGKey(0)
    kx, kw, kb = jax.random.split(key, 3)

    x = jax.random.normal(kx, (batch, emb_size), dtype=jnp.float32)

    # Deterministic synthetic parameters (PyTorch-style init).
    gamma = jnp.ones((emb_size,), jnp.float32)   # LayerNorm weight init
    beta = jnp.zeros((emb_size,), jnp.float32)   # LayerNorm bias init
    bound = 1.0 / (emb_size ** 0.5)
    weight = jax.random.uniform(kw, (n_classes, emb_size),
                                minval=-bound, maxval=bound, dtype=jnp.float32)
    bias = jax.random.uniform(kb, (n_classes,),
                              minval=-bound, maxval=bound, dtype=jnp.float32)
    weight_t = weight.T  # (E, C)

    ref = _reference(x, gamma, beta, weight_t, bias)

    # Default path: unpadded (lane-masked) output.
    out = jax.block_until_ready(
        classification_head(x, gamma, beta, weight_t, bias))
    assert out.shape == (batch, n_classes)
    assert jnp.allclose(out, ref, atol=1e-5, rtol=1e-5), "mismatch (default)"

    # Lane-dense-output fallback path (kept for v5e).
    out_ld = jax.block_until_ready(
        classification_head(x, gamma, beta, weight_t, bias,
                            lane_dense_output=True))
    assert out_ld.shape == (batch, n_classes)
    assert jnp.allclose(out_ld, ref, atol=1e-5, rtol=1e-5), "mismatch (lane-dense)"

    print("KERNEL_OK")
</pallas_src>

<mosaic_0001>
module attributes {stable_mosaic.version = 11 : i64} {
  func.func @_cls_head_kernel(%arg0: i32, %arg1: memref<8x32xf32, #tpu.memory_space<vmem>>, %arg2: memref<32x128xf32, #tpu.memory_space<vmem>>, %arg3: memref<1x128xf32, #tpu.memory_space<vmem>>, %arg4: memref<8x4xf32, #tpu.memory_space<vmem>>) attributes {dimension_semantics = [#tpu.dimension_semantics<parallel>], iteration_bounds = array<i64: 1>, scalar_prefetch = 0 : i64, scratch_operands = 0 : i64, tpu.core_type = #tpu.core_type<tc>, window_params = [{transform_indices = @transform_0, window_bounds = array<i64: 8, 32>}, {pipeline_mode = #tpu.pipeline_mode<synchronous>, transform_indices = @transform_1, window_bounds = array<i64: 32, 128>}, {pipeline_mode = #tpu.pipeline_mode<synchronous>, transform_indices = @transform_2, window_bounds = array<i64: 1, 128>}, {transform_indices = @transform_3, window_bounds = array<i64: 8, 4>}]} {
    %c0 = arith.constant 0 : index
    %c0_0 = arith.constant 0 : index
    %0 = vector.load %arg1[%c0, %c0_0] : memref<8x32xf32, #tpu.memory_space<vmem>>, vector<8x32xf32>
    %cst = arith.constant dense<0.000000e+00> : vector<8xf32>
    %1 = vector.multi_reduction <add>, %0, %cst [1] : vector<8x32xf32> to vector<8xf32>
    %2 = vector.shape_cast %1 : vector<8xf32> to vector<8x1xf32>
    %cst_1 = arith.constant 3.200000e+01 : f32
    %3 = vector.broadcast %cst_1 : f32 to vector<8x1xf32>
    %4 = arith.divf %2, %3 : vector<8x1xf32>
    %5 = vector.broadcast %4 : vector<8x1xf32> to vector<8x32xf32>
    %6 = arith.subf %0, %5 : vector<8x32xf32>
    %7 = arith.mulf %6, %6 : vector<8x32xf32>
    %cst_2 = arith.constant dense<0.000000e+00> : vector<8xf32>
    %8 = vector.multi_reduction <add>, %7, %cst_2 [1] : vector<8x32xf32> to vector<8xf32>
    %9 = vector.shape_cast %8 : vector<8xf32> to vector<8x1xf32>
    %cst_3 = arith.constant 3.200000e+01 : f32
    %10 = vector.broadcast %cst_3 : f32 to vector<8x1xf32>
    %11 = arith.divf %9, %10 : vector<8x1xf32>
    %cst_4 = arith.constant 9.99999974E-6 : f32
    %12 = vector.broadcast %cst_4 : f32 to vector<8x1xf32>
    %13 = arith.addf %11, %12 : vector<8x1xf32>
    %14 = math.rsqrt %13 : vector<8x1xf32>
    %15 = vector.broadcast %14 : vector<8x1xf32> to vector<8x32xf32>
    %16 = arith.mulf %6, %15 : vector<8x32xf32>
    %c0_5 = arith.constant 0 : index
    %c0_6 = arith.constant 0 : index
    %17 = vector.load %arg2[%c0_5, %c0_6] : memref<32x128xf32, #tpu.memory_space<vmem>>, vector<32x128xf32>
    %cst_7 = arith.constant dense<0.000000e+00> : vector<8x128xf32>
    %18 = tpu.matmul %16, %17, %cst_7 {dimension_numbers = #tpu.dot_dimension_numbers<[1], [0], [0], [1], [0, 0, 1, 1], [], []>} : vector<8x32xf32>, vector<32x128xf32>, vector<8x128xf32> -> vector<8x128xf32>
    %c0_8 = arith.constant 0 : index
    %c0_9 = arith.constant 0 : index
    %19 = vector.load %arg3[%c0_8, %c0_9] : memref<1x128xf32, #tpu.memory_space<vmem>>, vector<1x128xf32>
    %20 = vector.broadcast %19 : vector<1x128xf32> to vector<8x128xf32>
    %21 = arith.addf %18, %20 : vector<8x128xf32>
    %22 = vector.extract_strided_slice %21 {offsets = [0, 0], sizes = [8, 4], strides = [1, 1]} : vector<8x128xf32> to vector<8x4xf32>
    %23 = arith.negf %22 : vector<8x4xf32>
    %24 = math.exp %23 : vector<8x4xf32>
    %cst_10 = arith.constant 1.000000e+00 : f32
    %25 = vector.broadcast %cst_10 : f32 to vector<8x4xf32>
    %26 = arith.addf %25, %24 : vector<8x4xf32>
    %27 = arith.divf %25, %26 : vector<8x4xf32>
    %c0_11 = arith.constant 0 : index
    %c0_12 = arith.constant 0 : index
    %28 = vector.load %arg4[%c0_11, %c0_12] : memref<8x4xf32, #tpu.memory_space<vmem>>, vector<8x4xf32>
    tpu.vector_store %arg4[%c0_11, %c0_12], %27 {strides = array<i32>} : memref<8x4xf32, #tpu.memory_space<vmem>>, vector<8x4xf32>,
    return
  }
  func.func @transform_0(%arg0: i32) -> (i32, i32) {
    %c0_i32 = arith.constant 0 : i32
    %c0_i32_0 = arith.constant 0 : i32
    return %arg0, %c0_i32 : i32, i32
  }
  func.func @transform_1(%arg0: i32) -> (i32, i32) {
    %c0_i32 = arith.constant 0 : i32
    %c0_i32_0 = arith.constant 0 : i32
    %c0_i32_1 = arith.constant 0 : i32
    return %c0_i32, %c0_i32_0 : i32, i32
  }
  func.func @transform_2(%arg0: i32) -> (i32, i32) {
    %c0_i32 = arith.constant 0 : i32
    %c0_i32_0 = arith.constant 0 : i32
    %c0_i32_1 = arith.constant 0 : i32
    return %c0_i32, %c0_i32_0 : i32, i32
  }
  func.func @transform_3(%arg0: i32) -> (i32, i32) {
    %c0_i32 = arith.constant 0 : i32
    %c0_i32_0 = arith.constant 0 : i32
    return %arg0, %c0_i32 : i32, i32
  }
}

</mosaic_0001>

<bundles_post_ra>
// kernel: classification_head.1
= control target key start
LH: loop header
LB: loop body
LE: loop exit
PB: predicated region body
PF: predicated region fallthrough
CT: control target
= control target key end

     0   :  { %vm15_vm0 = vcmask 261120   ;;  %v153_v7 = vmov 0.0   ;;  %vm154_vm1 = vmmov 0   ;;  %vm120_vm2 = vcmask 31744   ;;  %s199_s0 = inlined_call_operand.vmem [shape: f32[8,32], index: 0, kind: input, shape index: {}]   ;;  %s200_s1 = inlined_call_operand.vmem [shape: f32[32,128], index: 1, kind: input, shape index: {}]   ;;  %s201_s2 = inlined_call_operand.vmem [shape: f32[1,128], index: 2, kind: input, shape index: {}]   ;;  %s202_s3 = inlined_call_operand.vmem [shape: f32[8,4], index: 3, kind: output, shape index: {}]  }
   0x1   :  { %v14_v0 = vld [vmem:[%s199_s0] sm:$0xff]  ;;  %134 = vmatprep.subr.mxu0 %v153_v7  ;;  %v33_v8 = vld [vmem:[%s200_s1 + $0x18] sm:$0xff]  ;;  %v32_v9 = vld [vmem:[%s200_s1 + $0x10] sm:$0xff]  ;;  %142 = vmatprep.mubr.msk.f32.mxu0 %vm154_vm1, %v153_v7 }
   0x2   :  { %v16_v1 = vsel %vm15_vm0, %v14_v0, 0.0  ;;  %135 = vmatpush3.msra.mxu0 %v33_v8  ;;  %v31_v10 = vld [vmem:[%s200_s1 + $0x8] sm:$0xff]  ;;  %v30_v11 = vld [vmem:[%s200_s1] sm:$0xff] }
   0x3   :  { %17 = vadd.xlane.f32.xlu0 %v16_v1  ;;  %136 = vmatprep.subr.mxu0 %v153_v7  ;;  %v126_v17 = vld [vmem:[%s201_s2] ss:$0 sm:$0xff] }
   0x4   :  { %137 = vmatpush3.msra.mxu0 %v32_v9 }
   0x5   :  { %138 = vmatprep.subr.mxu0 %v153_v7 }
   0x6   :  { %139 = vmatpush3.msra.mxu0 %v31_v10 }
   0x7   :  { %140 = vmatprep.subr.mxu0 %v153_v7 }
   0x8   :  { %141 = vmatpush3.msra.mxu0 %v30_v11 }
  0x8c   :  { %v18_v2 = vpop.xlane.xlu0 %17 }
  0x8d   :  { %v20_v3 = vmul.f32 0.03125, %v18_v2 }
  0x8f   :  { %v21_v4 = vsub.f32 %v14_v0, %v20_v3 }
  0x91   :  { %v22_v5 = vmul.f32 %v21_v4, %v21_v4 }
  0x93   :  { %v23_v6 = vsel %vm15_vm0, %v22_v5, 0.0 }
  0x94   :  { %24 = vadd.xlane.f32.xlu0 %v23_v6 }
 0x11d   :  { %v25_v12 = vpop.xlane.xlu0 %24 }
 0x11e   :  { %v26_v13 = vmul.f32 0.03125, %v25_v12 }
 0x120   :  { %v27_v14 = vadd.f32 1e-05, %v26_v13 }
 0x122   :  { %147 = vrsqrt.f32 %v27_v14 }
 0x12f   :  { %v148_v15 = vpop.eup %147 }
 0x130   :  { %v29_v16 = vmul.f32 %v148_v15, %v21_v4 }
 0x132   :  { %143 = vmatmul.mubr.msk.f32.vlgmr.msra.gmra.mxu0 %vm15_vm0, %v29_v16 }
 0x1f2   :  { %v110_v18 = vpop.f32.mrf.mxu0 }
 0x1f3   :  { %v111_v19 = vadd.f32 %v126_v17, %v110_v18 }
 0x1f4   :  { %v144_v20 = vpop.f32.mrf.mxu0 }
 0x1f5   :  { %v128_v21 = vmul.f32 -1.442695, %v111_v19 }
 0x1f7   :  { %149 = vpow2.f32 %v128_v21 }
 0x204   :  { %v150_v22 = vpop.eup %149 }
 0x205   :  { %v117_v23 = vadd.f32 1.0, %v150_v22 }
 0x207   :  { %151 = vrcp.f32 %v117_v23 }
 0x214   :  { %v152_v24 = vpop.eup %151 }
 0x215   :  { %121 = vst.msk [vmem:[%s202_s3] sm:$0xff] %vm120_vm2, %v152_v24 }

</bundles_post_ra>
